<compile_context>
chip_gen: v7x
topology: tpu7x:2x2x1
jax: 0.10.0
libtpu: 0.0.40
codegen_flags: <defaults>
</compile_context>

<pallas_src>
import functools

import jax
import jax.numpy as jnp
from jax.experimental import pallas as pl
from jax.experimental.pallas import tpu as pltpu

_NEG = -1e30  # finite "-inf" (plain Python float so it is never a captured constant)


def _round_up(x, m):
    return ((x + m - 1) // m) * m


def _clip_loss_kernel(scale_ref, e1_ref, e2_ref,
                      loss_ref, m_col_ref, l_col_ref,
                      m_row_ref, l_row_ref,
                      *, batch, block_r, block_c, need_mask):
    i = pl.program_id(0)          # row block of E1 (megacore-parallel axis)
    j = pl.program_id(1)          # col block of E2 (inner, sequential axis)
    nj = pl.num_programs(1)

    # ---- init per-row-block accumulators at the start of each inner sweep ----
    @pl.when(j == 0)
    def _init_row_block():
        loss_ref[...] = jnp.zeros_like(loss_ref)
        m_row_ref[...] = jnp.full_like(m_row_ref, _NEG)
        l_row_ref[...] = jnp.zeros_like(l_row_ref)

    scale = scale_ref[0, 0]

    # ---- one MXU tile: s * e1_i @ e2_j.T (native dtype in, f32 accumulate) ----
    e1b = e1_ref[...]                                             # (Tr, D)
    e2b = e2_ref[...]                                             # (Tc, D)
    logits = jax.lax.dot_general(
        e1b, e2b, (((1,), (1,)), ((), ())),
        preferred_element_type=jnp.float32) * scale               # (Tr, Tc) f32

    # hoisted global row / column index vectors (reused everywhere below)
    rix = i * block_r + jax.lax.broadcasted_iota(jnp.int32, (block_r, 1), 0)
    cix = j * block_c + jax.lax.broadcasted_iota(jnp.int32, (1, block_c), 1)

    if need_mask:
        row_ok = rix < batch
        col_ok = cix < batch
        logits_m = jnp.where(row_ok & col_ok, logits, _NEG)
    else:
        logits_m = logits

    # ---- correct-pair (diagonal) logits, only on tiles crossed by the diagonal ----
    diag_hits = (j * block_c < (i + 1) * block_r) & (i * block_r < (j + 1) * block_c)

    @pl.when(diag_hits)
    def _diag():
        dmask = rix == cix
        if need_mask:
            dmask = dmask & (rix < batch)
        d = jnp.where(dmask, logits, 0.0)                         # raw scaled logits
        dsum = jnp.sum(jnp.sum(d, axis=1, keepdims=True), axis=0, keepdims=True)
        loss_ref[...] = loss_ref[...] - 2.0 * dsum.reshape(1, 1, 1)

    # ---- online row-wise logsumexp (CE over rows of logits_1) ----
    row_max = jnp.max(logits_m, axis=1, keepdims=True)            # (Tr, 1)  XLU
    m_prev = m_row_ref[...]
    m_new = jnp.maximum(m_prev, row_max)
    p_row = jnp.exp(logits_m - m_new)                             # (Tr, Tc) EUP
    ones_c = jnp.ones((block_c, 128), dtype=jnp.float32)
    row_sum = jax.lax.dot_general(                                # exp-sum on the MXU
        p_row, ones_c, (((1,), (0,)), ((), ())),
        preferred_element_type=jnp.float32)[:, 0:1]               # (Tr, 1)
    l_row_ref[...] = l_row_ref[...] * jnp.exp(m_prev - m_new) + row_sum
    m_row_ref[...] = m_new

    # ---- per-tile column statistics (partial outputs, combined in JAX epilogue) ----
    col_max = jnp.max(logits_m, axis=0, keepdims=True)            # (1, Tc)  XLU
    p_col = jnp.exp(logits_m - col_max)                           # (Tr, Tc) EUP
    ones_r = jnp.ones((8, block_r), dtype=jnp.float32)
    col_sum = jax.lax.dot_general(                                # exp-sum on the MXU
        ones_r, p_col, (((1,), (0,)), ((), ())),
        preferred_element_type=jnp.float32)[0:1, :]               # (1, Tc)
    m_col_ref[...] = col_max.reshape(1, 1, 1, block_c)
    l_col_ref[...] = col_sum.reshape(1, 1, 1, block_c)

    # ---- finalize this row block's loss contribution on the last column block ----
    @pl.when(j == nj - 1)
    def _finish_rows():
        lse_row = m_row_ref[...] + jnp.log(l_row_ref[...])        # (Tr, 1)
        if need_mask:
            lse_row = jnp.where(row_ok, lse_row, 0.0)
        s = jnp.sum(lse_row, axis=0, keepdims=True)               # (1, 1)
        loss_ref[...] = loss_ref[...] + s.reshape(1, 1, 1)


def clip_loss(embedding_1, embedding_2, logit_scale=1.0,
              block_rows=None, block_cols=None):
    """Pallas implementation of CLIPLoss.forward (returns the scalar f32 loss)."""
    assert embedding_1.shape == embedding_2.shape and embedding_1.ndim == 2
    B, D = embedding_1.shape
    dtype = embedding_1.dtype
    itemsize = jnp.dtype(dtype).itemsize
    sub = max(8, 32 // itemsize)          # sublane pack minimum: f32→8, bf16→16, i8→32

    # Asymmetric default tiles: big resident E1 row stripe, 256-wide streamed E2.
    if block_cols is None:
        block_cols = 256 if B >= 256 else _round_up(B, sub)
    if block_rows is None:
        block_rows = 512 if B >= 512 else _round_up(B, sub)
    Tr, Tc = int(block_rows), int(block_cols)
    assert Tr % sub == 0 and Tc % sub == 0, "tile sizes must be sublane-aligned"

    # VMEM budget derived from the actual buffers (v7x has only 64 MiB physical).
    def _vmem_bytes(tr, tc):
        return (2 * 2 * (tr + tc) * D * itemsize   # double-buffered input stripes
                + 7 * tr * tc * 4                  # logits + exp / mask temporaries
                + 2 * tr * 128 * 4                 # row-LSE scratch (lane-padded)
                + (4 << 20))                       # headroom for Mosaic scratch
    while Tr > Tc and _vmem_bytes(Tr, Tc) > (44 << 20):
        Tr //= 2                                   # shrink the row stripe, never Tc
    vmem_limit = int(min(max(_vmem_bytes(Tr, Tc), 16 << 20), 56 << 20))

    Bp_r, Bp_c = _round_up(B, Tr), _round_up(B, Tc)
    nbr, nbc = Bp_r // Tr, Bp_c // Tc
    need_mask = (Bp_r != B) or (Bp_c != B)
    e1, e2 = embedding_1, embedding_2
    if Bp_r != B:
        e1 = jnp.pad(e1, ((0, Bp_r - B), (0, 0)))
    if Bp_c != B:
        e2 = jnp.pad(e2, ((0, Bp_c - B), (0, 0)))

    # Works for Python floats and traced / learnable scalars alike.
    scale = jnp.asarray(logit_scale, jnp.float32).reshape(1, 1)

    kernel = functools.partial(_clip_loss_kernel, batch=B, block_r=Tr, block_c=Tc,
                               need_mask=need_mask)

    loss_parts, m_col, l_col = pl.pallas_call(
        kernel,
        out_shape=(
            jax.ShapeDtypeStruct((nbr, 1, 1), jnp.float32),        # per-row-block loss
            jax.ShapeDtypeStruct((nbr, nbc, 1, Tc), jnp.float32),  # col max partials
            jax.ShapeDtypeStruct((nbr, nbc, 1, Tc), jnp.float32),  # col sum-exp partials
        ),
        grid_spec=pltpu.PrefetchScalarGridSpec(
            num_scalar_prefetch=0,
            grid=(nbr, nbc),
            in_specs=[
                pl.BlockSpec(memory_space=pltpu.MemorySpace.SMEM),  # logit scale
                pl.BlockSpec((Tr, D), lambda i, j: (i, 0)),         # E1 stripe (resident over j)
                pl.BlockSpec((Tc, D), lambda i, j: (j, 0)),         # E2 stripe (streamed)
            ],
            out_specs=[
                pl.BlockSpec((1, 1, 1), lambda i, j: (i, 0, 0)),
                pl.BlockSpec((1, 1, 1, Tc), lambda i, j: (i, j, 0, 0)),
                pl.BlockSpec((1, 1, 1, Tc), lambda i, j: (i, j, 0, 0)),
            ],
            scratch_shapes=[
                pltpu.VMEM((Tr, 1), jnp.float32),                   # m_row
                pltpu.VMEM((Tr, 1), jnp.float32),                   # l_row
            ],
        ),
        compiler_params=pltpu.CompilerParams(
            # Row blocks are fully independent -> megacore-parallel on v7x.
            dimension_semantics=("parallel", "arbitrary"),
            vmem_limit_bytes=vmem_limit,
        ),
        cost_estimate=pl.CostEstimate(
            flops=int(2 * Bp_r * Bp_c * D + 10 * Bp_r * Bp_c),
            transcendentals=int(2 * Bp_r * Bp_c),
            bytes_accessed=int(Bp_r * D * itemsize            # E1 read once
                               + nbr * Bp_c * D * itemsize    # E2 re-streamed per row block
                               + nbr * (1 + 2 * Bp_c) * 4),   # outputs
        ),
    )(scale, e1, e2)

    # ---- tiny JAX epilogue: combine column partials across row blocks ----
    m_col = m_col.reshape(nbr, Bp_c)[:, :B]
    l_col = l_col.reshape(nbr, Bp_c)[:, :B]
    m_max = jnp.max(m_col, axis=0)                                  # (B,)
    lse_col = m_max + jnp.log(jnp.sum(l_col * jnp.exp(m_col - m_max), axis=0))
    loss = (jnp.sum(loss_parts) + jnp.sum(lse_col)) / (2.0 * B)
    return loss


def _reference_clip_loss(e1, e2, logit_scale=1.0):
    logits_1 = logit_scale * e1 @ e2.T
    logits_2 = logit_scale * e2 @ e1.T
    labels = jnp.arange(logits_1.shape[0])

    def ce(logits):
        lse = jax.scipy.special.logsumexp(logits, axis=1)
        picked = logits[jnp.arange(logits.shape[0]), labels]
        return jnp.mean(lse - picked)

    return 0.5 * (ce(logits_1) + ce(logits_2))


if __name__ == "__main__":
    key = jax.random.PRNGKey(0)
    k1, k2 = jax.random.split(key)
    hidden = 32

    # Case 1: module's toy shape, single-tile grid.
    e1 = jax.random.normal(k1, (8, hidden), dtype=jnp.float32)
    e2 = jax.random.normal(k2, (8, hidden), dtype=jnp.float32)
    loss = clip_loss(e1, e2, logit_scale=1.0)
    jax.block_until_ready(loss)
    ref = _reference_clip_loss(e1, e2, 1.0)
    assert jnp.allclose(loss, ref, rtol=1e-4, atol=1e-4), (loss, ref)

    # Case 2: 3x3 multi-block grid, no padding (exercises online row LSE + column combine).
    e1b = jax.random.normal(k2, (24, hidden), dtype=jnp.float32)
    e2b = jax.random.normal(k1, (24, hidden), dtype=jnp.float32)
    loss2 = clip_loss(e1b, e2b, logit_scale=2.5, block_rows=8, block_cols=8)
    jax.block_until_ready(loss2)
    ref2 = _reference_clip_loss(e1b, e2b, 2.5)
    assert jnp.allclose(loss2, ref2, rtol=1e-4, atol=1e-4), (loss2, ref2)

    # Case 3: asymmetric tiles + padding/mask path + traced logit scale under jit.
    e1c = jax.random.normal(k1, (20, hidden), dtype=jnp.float32)
    e2c = jax.random.normal(k2, (20, hidden), dtype=jnp.float32)
    loss3_fn = jax.jit(lambda a, b, s: clip_loss(a, b, s, block_rows=16, block_cols=8))
    loss3 = loss3_fn(e1c, e2c, jnp.float32(1.7))
    jax.block_until_ready(loss3)
    ref3 = _reference_clip_loss(e1c, e2c, 1.7)
    assert jnp.allclose(loss3, ref3, rtol=1e-4, atol=1e-4), (loss3, ref3)

    print("KERNEL_OK")
</pallas_src>

<mosaic_0001>
module attributes {stable_mosaic.version = 11 : i64} {
  func.func @_clip_loss_kernel(%arg0: i32, %arg1: i32, %arg2: memref<1x1xf32, #tpu.memory_space<smem>>, %arg3: memref<8x32xf32, #tpu.memory_space<vmem>>, %arg4: memref<8x32xf32, #tpu.memory_space<vmem>>, %arg5: memref<1x1x1xf32, #tpu.memory_space<vmem>>, %arg6: memref<1x1x1x8xf32, #tpu.memory_space<vmem>>, %arg7: memref<1x1x1x8xf32, #tpu.memory_space<vmem>>, %arg8: memref<8x1xf32, #tpu.memory_space<vmem>>, %arg9: memref<8x1xf32, #tpu.memory_space<vmem>>) attributes {dimension_semantics = [#tpu.dimension_semantics<parallel>, #tpu.dimension_semantics<arbitrary>], iteration_bounds = array<i64: 1, 1>, scalar_prefetch = 0 : i64, scratch_operands = 2 : i64, tpu.core_type = #tpu.core_type<tc>, window_params = [{transform_indices = @transform_0, window_bounds = array<i64: 1, 1>}, {transform_indices = @transform_1, window_bounds = array<i64: 8, 32>}, {transform_indices = @transform_2, window_bounds = array<i64: 8, 32>}, {transform_indices = @transform_3, window_bounds = array<i64: 1, 1, 1>}, {transform_indices = @transform_4, window_bounds = array<i64: 1, 1, 1, 8>}, {transform_indices = @transform_5, window_bounds = array<i64: 1, 1, 1, 8>}]} {
    %c0_i32 = arith.constant 0 : i32
    %0 = arith.cmpi eq, %arg1, %c0_i32 : i32
    %1 = arith.extui %0 : i1 to i32
    %c0_i32_0 = arith.constant 0 : i32
    %2 = arith.cmpi ne, %1, %c0_i32_0 : i32
    scf.if %2 {
      %cst_37 = arith.constant 0.000000e+00 : f32
      %60 = vector.broadcast %cst_37 : f32 to vector<1x1x1xf32>
      %c0_38 = arith.constant 0 : index
      %c0_39 = arith.constant 0 : index
      %c0_40 = arith.constant 0 : index
      %61 = vector.load %arg5[%c0_38, %c0_39, %c0_40] : memref<1x1x1xf32, #tpu.memory_space<vmem>>, vector<1x1x1xf32>
      tpu.vector_store %arg5[%c0_38, %c0_39, %c0_40], %60 {strides = array<i32>} : memref<1x1x1xf32, #tpu.memory_space<vmem>>, vector<1x1x1xf32>,
      %cst_41 = arith.constant -1.000000e+30 : f32
      %62 = vector.broadcast %cst_41 : f32 to vector<8x1xf32>
      %c0_42 = arith.constant 0 : index
      %c0_43 = arith.constant 0 : index
      %63 = vector.load %arg8[%c0_42, %c0_43] : memref<8x1xf32, #tpu.memory_space<vmem>>, vector<8x1xf32>
      tpu.vector_store %arg8[%c0_42, %c0_43], %62 {strides = array<i32>} : memref<8x1xf32, #tpu.memory_space<vmem>>, vector<8x1xf32>,
      %cst_44 = arith.constant 0.000000e+00 : f32
      %64 = vector.broadcast %cst_44 : f32 to vector<8x1xf32>
      %c0_45 = arith.constant 0 : index
      %c0_46 = arith.constant 0 : index
      %65 = vector.load %arg9[%c0_45, %c0_46] : memref<8x1xf32, #tpu.memory_space<vmem>>, vector<8x1xf32>
      tpu.vector_store %arg9[%c0_45, %c0_46], %64 {strides = array<i32>} : memref<8x1xf32, #tpu.memory_space<vmem>>, vector<8x1xf32>,
    } else {
    }
    %c0 = arith.constant 0 : index
    %c0_1 = arith.constant 0 : index
    %3 = memref.load %arg2[%c0, %c0_1] : memref<1x1xf32, #tpu.memory_space<smem>>
    %c0_2 = arith.constant 0 : index
    %c0_3 = arith.constant 0 : index
    %4 = vector.load %arg3[%c0_2, %c0_3] : memref<8x32xf32, #tpu.memory_space<vmem>>, vector<8x32xf32>
    %c0_4 = arith.constant 0 : index
    %c0_5 = arith.constant 0 : index
    %5 = vector.load %arg4[%c0_4, %c0_5] : memref<8x32xf32, #tpu.memory_space<vmem>>, vector<8x32xf32>
    %cst = arith.constant dense<0.000000e+00> : vector<8x8xf32>
    %6 = tpu.matmul %4, %5, %cst {dimension_numbers = #tpu.dot_dimension_numbers<[1], [1], [0], [0], [0, 0, 1, 0], [], []>} : vector<8x32xf32>, vector<8x32xf32>, vector<8x8xf32> -> vector<8x8xf32>
    %7 = vector.broadcast %3 : f32 to vector<8x8xf32>
    %8 = arith.mulf %6, %7 : vector<8x8xf32>
    %c8_i32 = arith.constant 8 : i32
    %9 = arith.muli %arg0, %c8_i32 : i32
    %10 = tpu.iota {dimensions = array<i32: 0>} : vector<8x1xi32>
    %11 = vector.broadcast %9 : i32 to vector<8x1xi32>
    %12 = arith.addi %11, %10 : vector<8x1xi32>
    %c8_i32_6 = arith.constant 8 : i32
    %13 = arith.muli %arg1, %c8_i32_6 : i32
    %14 = tpu.iota {dimensions = array<i32: 1>} : vector<1x8xi32>
    %15 = vector.broadcast %13 : i32 to vector<1x8xi32>
    %16 = arith.addi %15, %14 : vector<1x8xi32>
    %c8_i32_7 = arith.constant 8 : i32
    %17 = arith.muli %arg1, %c8_i32_7 : i32
    %c1_i32 = arith.constant 1 : i32
    %18 = arith.addi %arg0, %c1_i32 : i32
    %c8_i32_8 = arith.constant 8 : i32
    %19 = arith.muli %18, %c8_i32_8 : i32
    %20 = arith.cmpi slt, %17, %19 : i32
    %c8_i32_9 = arith.constant 8 : i32
    %21 = arith.muli %arg0, %c8_i32_9 : i32
    %c1_i32_10 = arith.constant 1 : i32
    %22 = arith.addi %arg1, %c1_i32_10 : i32
    %c8_i32_11 = arith.constant 8 : i32
    %23 = arith.muli %22, %c8_i32_11 : i32
    %24 = arith.cmpi slt, %21, %23 : i32
    %25 = arith.andi %20, %24 : i1
    %26 = arith.extui %25 : i1 to i32
    %c0_i32_12 = arith.constant 0 : i32
    %27 = arith.cmpi ne, %26, %c0_i32_12 : i32
    scf.if %27 {
      %60 = vector.broadcast %12 : vector<8x1xi32> to vector<8x8xi32>
      %61 = vector.broadcast %16 : vector<1x8xi32> to vector<8x8xi32>
      %62 = arith.cmpi eq, %60, %61 : vector<8x8xi32>
      %cst_37 = arith.constant 0.000000e+00 : f32
      %63 = vector.broadcast %cst_37 : f32 to vector<8x8xf32>
      %64 = arith.select %62, %8, %63 : vector<8x8xi1>, vector<8x8xf32>
      %cst_38 = arith.constant dense<0.000000e+00> : vector<8xf32>
      %65 = vector.multi_reduction <add>, %64, %cst_38 [1] : vector<8x8xf32> to vector<8xf32>
      %66 = vector.shape_cast %65 : vector<8xf32> to vector<8x1xf32>
      %cst_39 = arith.constant dense<0.000000e+00> : vector<1xf32>
      %67 = vector.multi_reduction <add>, %66, %cst_39 [0] : vector<8x1xf32> to vector<1xf32>
      %68 = vector.shape_cast %67 : vector<1xf32> to vector<1x1xf32>
      %c0_40 = arith.constant 0 : index
      %c0_41 = arith.constant 0 : index
      %c0_42 = arith.constant 0 : index
      %69 = vector.load %arg5[%c0_40, %c0_41, %c0_42] : memref<1x1x1xf32, #tpu.memory_space<vmem>>, vector<1x1x1xf32>
      %70 = vector.shape_cast %68 : vector<1x1xf32> to vector<1x1x1xf32>
      %cst_43 = arith.constant 2.000000e+00 : f32
      %71 = vector.broadcast %cst_43 : f32 to vector<1x1x1xf32>
      %72 = arith.mulf %71, %70 : vector<1x1x1xf32>
      %73 = arith.subf %69, %72 : vector<1x1x1xf32>
      %c0_44 = arith.constant 0 : index
      %c0_45 = arith.constant 0 : index
      %c0_46 = arith.constant 0 : index
      %74 = vector.load %arg5[%c0_44, %c0_45, %c0_46] : memref<1x1x1xf32, #tpu.memory_space<vmem>>, vector<1x1x1xf32>
      tpu.vector_store %arg5[%c0_44, %c0_45, %c0_46], %73 {strides = array<i32>} : memref<1x1x1xf32, #tpu.memory_space<vmem>>, vector<1x1x1xf32>,
    } else {
    }
    %cst_13 = arith.constant dense<0xFF800000> : vector<8xf32>
    %28 = vector.multi_reduction <maximumf>, %8, %cst_13 [1] : vector<8x8xf32> to vector<8xf32>
    %29 = vector.shape_cast %28 : vector<8xf32> to vector<8x1xf32>
    %c0_14 = arith.constant 0 : index
    %c0_15 = arith.constant 0 : index
    %30 = vector.load %arg8[%c0_14, %c0_15] : memref<8x1xf32, #tpu.memory_space<vmem>>, vector<8x1xf32>
    %31 = arith.maximumf %30, %29 : vector<8x1xf32>
    %32 = vector.broadcast %31 : vector<8x1xf32> to vector<8x8xf32>
    %33 = arith.subf %8, %32 : vector<8x8xf32>
    %34 = math.exp %33 : vector<8x8xf32>
    %cst_16 = arith.constant 1.000000e+00 : f32
    %35 = vector.broadcast %cst_16 : f32 to vector<8x128xf32>
    %cst_17 = arith.constant dense<0.000000e+00> : vector<8x128xf32>
    %36 = tpu.matmul %34, %35, %cst_17 {dimension_numbers = #tpu.dot_dimension_numbers<[1], [0], [0], [1], [0, 0, 1, 1], [], []>} : vector<8x8xf32>, vector<8x128xf32>, vector<8x128xf32> -> vector<8x128xf32>
    %37 = vector.extract_strided_slice %36 {offsets = [0, 0], sizes = [8, 1], strides = [1, 1]} : vector<8x128xf32> to vector<8x1xf32>
    %c0_18 = arith.constant 0 : index
    %c0_19 = arith.constant 0 : index
    %38 = vector.load %arg9[%c0_18, %c0_19] : memref<8x1xf32, #tpu.memory_space<vmem>>, vector<8x1xf32>
    %39 = arith.subf %30, %31 : vector<8x1xf32>
    %40 = math.exp %39 : vector<8x1xf32>
    %41 = arith.mulf %38, %40 : vector<8x1xf32>
    %42 = arith.addf %41, %37 : vector<8x1xf32>
    %c0_20 = arith.constant 0 : index
    %c0_21 = arith.constant 0 : index
    %43 = vector.load %arg9[%c0_20, %c0_21] : memref<8x1xf32, #tpu.memory_space<vmem>>, vector<8x1xf32>
    tpu.vector_store %arg9[%c0_20, %c0_21], %42 {strides = array<i32>} : memref<8x1xf32, #tpu.memory_space<vmem>>, vector<8x1xf32>,
    %c0_22 = arith.constant 0 : index
    %c0_23 = arith.constant 0 : index
    %44 = vector.load %arg8[%c0_22, %c0_23] : memref<8x1xf32, #tpu.memory_space<vmem>>, vector<8x1xf32>
    tpu.vector_store %arg8[%c0_22, %c0_23], %31 {strides = array<i32>} : memref<8x1xf32, #tpu.memory_space<vmem>>, vector<8x1xf32>,
    %cst_24 = arith.constant dense<0xFF800000> : vector<8xf32>
    %45 = vector.multi_reduction <maximumf>, %8, %cst_24 [0] : vector<8x8xf32> to vector<8xf32>
    %46 = vector.shape_cast %45 : vector<8xf32> to vector<1x8xf32>
    %47 = vector.broadcast %46 : vector<1x8xf32> to vector<8x8xf32>
    %48 = arith.subf %8, %47 : vector<8x8xf32>
    %49 = math.exp %48 : vector<8x8xf32>
    %cst_25 = arith.constant 1.000000e+00 : f32
    %50 = vector.broadcast %cst_25 : f32 to vector<8x8xf32>
    %cst_26 = arith.constant dense<0.000000e+00> : vector<8x8xf32>
    %51 = tpu.matmul %50, %49, %cst_26 {dimension_numbers = #tpu.dot_dimension_numbers<[1], [0], [0], [1], [0, 0, 1, 1], [], []>} : vector<8x8xf32>, vector<8x8xf32>, vector<8x8xf32> -> vector<8x8xf32>
    %52 = vector.extract_strided_slice %51 {offsets = [0, 0], sizes = [1, 8], strides = [1, 1]} : vector<8x8xf32> to vector<1x8xf32>
    %53 = vector.shape_cast %46 : vector<1x8xf32> to vector<1x1x1x8xf32>
    %c0_27 = arith.constant 0 : index
    %c0_28 = arith.constant 0 : index
    %c0_29 = arith.constant 0 : index
    %c0_30 = arith.constant 0 : index
    %54 = vector.load %arg6[%c0_27, %c0_28, %c0_29, %c0_30] : memref<1x1x1x8xf32, #tpu.memory_space<vmem>>, vector<1x1x1x8xf32>
    tpu.vector_store %arg6[%c0_27, %c0_28, %c0_29, %c0_30], %53 {strides = array<i32>} : memref<1x1x1x8xf32, #tpu.memory_space<vmem>>, vector<1x1x1x8xf32>,
    %55 = vector.shape_cast %52 : vector<1x8xf32> to vector<1x1x1x8xf32>
    %c0_31 = arith.constant 0 : index
    %c0_32 = arith.constant 0 : index
    %c0_33 = arith.constant 0 : index
    %c0_34 = arith.constant 0 : index
    %56 = vector.load %arg7[%c0_31, %c0_32, %c0_33, %c0_34] : memref<1x1x1x8xf32, #tpu.memory_space<vmem>>, vector<1x1x1x8xf32>
    tpu.vector_store %arg7[%c0_31, %c0_32, %c0_33, %c0_34], %55 {strides = array<i32>} : memref<1x1x1x8xf32, #tpu.memory_space<vmem>>, vector<1x1x1x8xf32>,
    %c0_i32_35 = arith.constant 0 : i32
    %57 = arith.cmpi eq, %arg1, %c0_i32_35 : i32
    %58 = arith.extui %57 : i1 to i32
    %c0_i32_36 = arith.constant 0 : i32
    %59 = arith.cmpi ne, %58, %c0_i32_36 : i32
    scf.if %59 {
      %c0_37 = arith.constant 0 : index
      %c0_38 = arith.constant 0 : index
      %60 = vector.load %arg8[%c0_37, %c0_38] : memref<8x1xf32, #tpu.memory_space<vmem>>, vector<8x1xf32>
      %c0_39 = arith.constant 0 : index
      %c0_40 = arith.constant 0 : index
      %61 = vector.load %arg9[%c0_39, %c0_40] : memref<8x1xf32, #tpu.memory_space<vmem>>, vector<8x1xf32>
      %62 = math.log %61 : vector<8x1xf32>
      %63 = arith.addf %60, %62 : vector<8x1xf32>
      %cst_41 = arith.constant dense<0.000000e+00> : vector<1xf32>
      %64 = vector.multi_reduction <add>, %63, %cst_41 [0] : vector<8x1xf32> to vector<1xf32>
      %65 = vector.shape_cast %64 : vector<1xf32> to vector<1x1xf32>
      %c0_42 = arith.constant 0 : index
      %c0_43 = arith.constant 0 : index
      %c0_44 = arith.constant 0 : index
      %66 = vector.load %arg5[%c0_42, %c0_43, %c0_44] : memref<1x1x1xf32, #tpu.memory_space<vmem>>, vector<1x1x1xf32>
      %67 = vector.shape_cast %65 : vector<1x1xf32> to vector<1x1x1xf32>
      %68 = arith.addf %66, %67 : vector<1x1x1xf32>
      %c0_45 = arith.constant 0 : index
      %c0_46 = arith.constant 0 : index
      %c0_47 = arith.constant 0 : index
      %69 = vector.load %arg5[%c0_45, %c0_46, %c0_47] : memref<1x1x1xf32, #tpu.memory_space<vmem>>, vector<1x1x1xf32>
      tpu.vector_store %arg5[%c0_45, %c0_46, %c0_47], %68 {strides = array<i32>} : memref<1x1x1xf32, #tpu.memory_space<vmem>>, vector<1x1x1xf32>,
    } else {
    }
    return
  }
  func.func @transform_0(%arg0: i32, %arg1: i32) -> (i32, i32) {
    %c0_i32 = arith.constant 0 : i32
    %c0_i32_0 = arith.constant 0 : i32
    %c0_i32_1 = arith.constant 0 : i32
    return %c0_i32, %c0_i32_0 : i32, i32
  }
  func.func @transform_1(%arg0: i32, %arg1: i32) -> (i32, i32) {
    %c0_i32 = arith.constant 0 : i32
    %c0_i32_0 = arith.constant 0 : i32
    return %arg0, %c0_i32 : i32, i32
  }
  func.func @transform_2(%arg0: i32, %arg1: i32) -> (i32, i32) {
    %c0_i32 = arith.constant 0 : i32
    %c0_i32_0 = arith.constant 0 : i32
    return %arg1, %c0_i32 : i32, i32
  }
  func.func @transform_3(%arg0: i32, %arg1: i32) -> (i32, i32, i32) {
    %c0_i32 = arith.constant 0 : i32
    %c0_i32_0 = arith.constant 0 : i32
    %c0_i32_1 = arith.constant 0 : i32
    return %arg0, %c0_i32, %c0_i32_0 : i32, i32, i32
  }
  func.func @transform_4(%arg0: i32, %arg1: i32) -> (i32, i32, i32, i32) {
    %c0_i32 = arith.constant 0 : i32
    %c0_i32_0 = arith.constant 0 : i32
    %c0_i32_1 = arith.constant 0 : i32
    return %arg0, %arg1, %c0_i32, %c0_i32_0 : i32, i32, i32, i32
  }
  func.func @transform_5(%arg0: i32, %arg1: i32) -> (i32, i32, i32, i32) {
    %c0_i32 = arith.constant 0 : i32
    %c0_i32_0 = arith.constant 0 : i32
    %c0_i32_1 = arith.constant 0 : i32
    return %arg0, %arg1, %c0_i32, %c0_i32_0 : i32, i32, i32, i32
  }
}

</mosaic_0001>

<bundles_post_ra>
// kernel: tpu_custom_call.1
= control target key start
LH: loop header
LB: loop body
LE: loop exit
PB: predicated region body
PF: predicated region fallthrough
CT: control target
= control target key end

     0   :  { %12 = vsyncpa [#allocation6], 0  ;;  %s705_s0 = inlined_call_operand.<no memory space> [shape: f32[1,1], index: 0, kind: input, shape index: {}]   ;;  %s706_s1 = inlined_call_operand.hbm [shape: f32[8,32], index: 1, kind: input, shape index: {}]   ;;  %s707_s2 = inlined_call_operand.hbm [shape: f32[8,32], index: 2, kind: input, shape index: {}]   ;;  %s708_s3 = inlined_call_operand.hbm [shape: f32[1,1,1], index: 3, kind: output, shape index: {0}]   ;;  %s709_s4 = inlined_call_operand.hbm [shape: f32[1,1,1,8], index: 4, kind: output, shape index: {1}]   ;;  %s710_s5 = inlined_call_operand.hbm [shape: f32[1,1,1,8], index: 5, kind: output, shape index: {2}]  }
   0x1   :  { %13 = vsyncpa [#allocation9], 0 }
   0x2   :  { %14 = vsyncpa [#allocation7], 0 }
   0x3   :  { %15 = vsyncpa [#allocation12], 0  ;;  %s577_s18 = smov [#allocation5]   ;;  %s578_s20 = smov [#allocation8]  }
   0x4   :  { %s24_s19 = sshll.u32 %s577_s18, 4  ;;  %s34_s21 = sshll.u32 %s578_s20, 4  ;;  %s25_s19 = int_to_ptr.vmem [resolvable:$true] %s24_s19  ;;  %s35_s21 = int_to_ptr.vmem [resolvable:$true] %s34_s21 }
   0x5   :  { %s459_s24 = scalar_lea.hbm %s706_s1, 128 }
   0x6   :  { %p460_p0 = scmp.ne.s32.totalorder %s706_s1, %s459_s24  ;;  %p463_p1 = scmp.lt.u32.totalorder %s459_s24, %s706_s1 }
   0x8   :  { %p465_p2 = pnand %p463_p1, %p460_p0 }
   0xa   :  { %468 = shalt.err (!%p465_p2)
}
   0xb   :  { %s469_s29 = scalar_lea.vmem %s25_s19, 128  ;;  %p474_p4 = scmp.lt.s32.totalorder %s25_s19, %s25_s19 }
   0xc   :  { %p470_p3 = scmp.ne.s32.totalorder %s25_s19, %s469_s29  ;;  %p475_p5 = scmp.lt.s32.totalorder %s469_s29, %s469_s29 }
   0xe   :  { %p476_p6 = por %p475_p5, %p474_p4 }
  0x10   :  { %p477_p7 = pnand %p476_p6, %p470_p3 }
  0x12   :  { %480 = shalt.err (!%p477_p7)
}
  0x13   :  { %27 = dma.hbm_to_vmem [thread:$0]  %s706_s1, 128, %s25_s19, [#allocation6]  }
  0x14   :  { %s481_s9 = scalar_lea.hbm %s707_s2, 128 }
  0x15   :  { %p482_p8 = scmp.ne.s32.totalorder %s707_s2, %s481_s9  ;;  %p485_p9 = scmp.lt.u32.totalorder %s481_s9, %s707_s2 }
  0x17   :  { %p487_p10 = pnand %p485_p9, %p482_p8 }
  0x19   :  { %490 = shalt.err (!%p487_p10)
}
  0x1a   :  { %s491_s14 = scalar_lea.vmem %s35_s21, 128  ;;  %p496_p12 = scmp.lt.s32.totalorder %s35_s21, %s35_s21 }
  0x1b   :  { %p492_p11 = scmp.ne.s32.totalorder %s35_s21, %s491_s14  ;;  %p497_p13 = scmp.lt.s32.totalorder %s491_s14, %s491_s14 }
  0x1d   :  { %p498_p0 = por %p497_p13, %p496_p12 }
  0x1f   :  { %p499_p1 = pnand %p498_p0, %p492_p11 }
  0x21   :  { %502 = shalt.err (!%p499_p1)
}
  0x22   :  { %37 = dma.hbm_to_vmem [thread:$0]  %s707_s2, 128, %s35_s21, [#allocation9]  }
  0x23   :  { %569 = dma.done.wait [#allocation6], 128  }
  0x24   :  { %570 = vsyncadd [#allocation6], 4294967168 }
  0x25   :  { %571 = dma.done.wait [#allocation9], 128  }
  0x26   :  { %572 = vsyncadd [#allocation9], 4294967168  ;;  %v579_v0 = vmov 0.0   ;;  %vm580_vm0 = vmmov 0   ;;  %vm56_vm1 = vcmask 261120   ;;  %v55_v1 = vld [vmem:[#allocation8] sm:$0xff]  ;;  %v136_v4 = vlaneseq }
  0x27   :  { %425 = vmatprep.subr.mxu0 %v579_v0  ;;  %427 = vmatprep.mubr.msk.f32.mxu0 %vm580_vm0, %v579_v0  ;;  %v54_v2 = vld [vmem:[#allocation5] sm:$0xff]  ;;  %vm50_vm2 = vcmask 7168   ;;  %v581_v3 = vmov -1e+30   ;;  %v133_v7 = vstv %s705_s0  ;;  %vm157_vm3 = vcmask 64512   ;;  %s584_s0 = smov [#allocation11]  }
  0x28   :  { %430 = vmatprep.subr.mxu1 %v579_v0  ;;  %432 = vmatprep.mubr.msk.f32.mxu1 %vm580_vm0, %v579_v0  ;;  %51 = vst.msk [vmem:[#allocation2] sm:$0xff] %vm50_vm2, %v581_v3  ;;  %52 = vst.msk [vmem:[#allocation3] sm:$0xff] %vm50_vm2, %v579_v0  ;;  %v137_v5 = vshrl.u32 %v136_v4, 7  ;;  %v142_v6 = vand.u32 127, %v136_v4  ;;  %vm350_vm5 = vcmask 57344   ;;  %v582_v20 = vmov 0  }
  0x29   :  { %426 = vmatpush3.xpose.msk.msra.mxu0 %vm56_vm1, %v55_v1  ;;  %450 = vset.pattern.permute.xlu0 %v582_v20  ;;  %vm48_vm6 = vcmask 0   ;;  %v583_v30 = vmov 1.0   ;;  %s388_s17 = sshll.u32 %s584_s0, 4  ;;  %s389_s17 = int_to_ptr.vmem [resolvable:$true] %s388_s17 }
  0x2a   :  { %vm155_vm4 = vcmp.eq.s32.totalorder %v137_v5, %v142_v6  ;;  %49 = vst.msk [vmem:[#allocation10] sm:$0x1] %vm48_vm6, %v579_v0  ;;  %431 = vmatpush3.msra.mxu1 %v583_v30  ;;  %s503_s18 = scalar_lea.vmem %s389_s17, 16  ;;  %s507_s19 = scalar_lea.vmem %s389_s17, 32 }
  0x2b   :  { %435 = vmatprep.subr.mxu1 %v579_v0  ;;  %p504_p2 = scmp.ne.s32.totalorder %s389_s17, %s503_s18  ;;  %p508_p3 = scmp.lt.s32.totalorder %s389_s17, %s389_s17 }
  0x2c   :  { %428 = vmatmul.mubr.msk.f32.vlgmr.msra.gmra.mrb[0].mxu0 %vm56_vm1, %v54_v2  ;;  %p509_p4 = scmp.lt.s32.totalorder %s507_s19, %s503_s18 }
  0x2e   :  { %p510_p5 = por %p509_p4, %p508_p3 }
  0x2f   :  { %v176_v21 = vld [vmem:[#allocation2] sm:$0xff] }
  0x30   :  { %p511_p6 = pnand %p510_p5, %p504_p2 }
  0x31   :  { %v167_v33 = vld [vmem:[#allocation10] sm:$0x1] }
  0xff   :  { %v129_v8 = vpop.f32.mrb[0].mxu0 }
 0x100   :  { %v134_v9 = vmul.f32 %v133_v7, %v129_v8  ;;  %v429_v10 = vpop.f32.mrb[1].mxu0 }
 0x102   :  { %v173_v11 = vsel %vm157_vm3, %v134_v9, -inf  ;;  %v156_v12 = vsel %vm155_vm4, %v134_v9, 0.0 }
 0x103   :  { %174 = vmax.xlane.f32.xlu0 %v173_v11  ;;  %v268_v13 = vrot.slane %v173_v11, 4  ;;  %v158_v14 = vsel %vm157_vm3, %v156_v12, 0.0 }
 0x104   :  { %159 = vadd.xlane.f32.xlu1 %v158_v14 }
 0x105   :  { %v269_v15 = vmax.f32 %v173_v11, %v268_v13 }
 0x107   :  { %v270_v16 = vrot.slane %v269_v15, 2 }
 0x109   :  { %v271_v17 = vmax.f32 %v269_v15, %v270_v16 }
 0x10b   :  { %v272_v18 = vrot.slane %v271_v17, 1 }
 0x10d   :  { %v273_v19 = vmax.f32 %v271_v17, %v272_v18 }
 0x10f   :  { %351 = vst.msk [vmem:[#allocation11] sm:$0x1] %vm350_vm5, %v273_v19  ;;  %v274_v36 = vsub.f32 %v134_v9, %v273_v19 }
 0x111   :  { %v275_v39 = vmul.f32 1.442695, %v274_v36 }
 0x190   :  { %v175_v22 = vpop.xlane.xlu0 %174 }
 0x191   :  { %v177_v23 = vmax.f32 %v176_v21, %v175_v22  ;;  %v160_v24 = vpop.xlane.xlu1 %159 }
 0x192   :  { %v161_v25 = vrot.slane %v160_v24, 4 }
 0x193   :  { %v260_v26 = vsub.f32 %v176_v21, %v177_v23  ;;  %267 = vst.msk [vmem:[#allocation2] sm:$0xff] %vm50_vm2, %v177_v23  ;;  %180 = vperm.xlu0 %450, %v177_v23  }
 0x194   :  { %v162_v27 = vadd.f32 %v161_v25, %v160_v24 }
 0x196   :  { %v163_v28 = vrot.slane %v162_v27, 2 }
 0x198   :  { %v164_v29 = vadd.f32 %v163_v28, %v162_v27 }
 0x19a   :  { %v165_v31 = vrot.slane %v164_v29, 1 }
 0x19c   :  { %v166_v32 = vadd.f32 %v165_v31, %v164_v29 }
 0x19e   :  { %v168_v34 = vmul.f32 2.0, %v166_v32 }
 0x1a0   :  { %v169_v35 = vsub.f32 %v167_v33, %v168_v34 }
 0x1a2   :  { %171 = vst.msk [vmem:[#allocation10] sm:$0x1] %vm48_vm6, %v169_v35 }
 0x212   :  { %v181_v37 = vpop.permute.xlu0 %180 }
 0x213   :  { %v183_v38 = vsub.f32 %v134_v9, %v181_v37 }
 0x215   :  { %v184_v40 = vmul.f32 1.442695, %v183_v38 }
 0x217   :  { %451 = vpow2.f32 %v184_v40 }
 0x218   :  { %453 = vpow2.f32 %v275_v39 }
 0x221   :  { %v452_v41 = vpop.eup %451 }
 0x222   :  { %v454_v42 = vpop.eup %453  ;;  %433 = vmatmul.mubr.msk.f32.vlgmr.msra.gmra.mrb[0].mxu1 %vm157_vm3, %v452_v41 }
 0x223   :  { %436 = vmatpush3.msra.mxu1 %v454_v42  ;;  %437 = vmatprep.mubr.msk.f32.mxu1 %vm580_vm0, %v579_v0 }
 0x226   :  { %438 = vmatmul.mubr.msk.f32.vlgmr.msra.gmra.mrb[2].mxu1 %vm157_vm3, %v583_v30 }
 0x227   :  { %514 = shalt.err (!%p511_p6)
}
 0x228   :  { %s515_s22 = scalar_lea.hbm %s709_s4, 16 }
 0x229   :  { %p516_p7 = scmp.ne.s32.totalorder %s709_s4, %s515_s22  ;;  %p519_p8 = scmp.lt.u32.totalorder %s515_s22, %s709_s4 }
 0x22b   :  { %p521_p9 = pnand %p519_p8, %p516_p7 }
 0x22d   :  { %524 = shalt.err (!%p521_p9)
}
 0x22e   :  { %391 = dma.vmem_to_hbm [thread:$0]  %s389_s17, 16, %s709_s4, [#allocation12]   ;;  %v261_v43 = vmul.f32 1.442695, %v260_v26  ;;  %v259_v45 = vld [vmem:[#allocation3] sm:$0xff] }
 0x22f   :  { %s585_s29 = smov [#allocation13]  }
 0x230   :  { %455 = vpow2.f32 %v261_v43  ;;  %s398_s30 = sshll.u32 %s585_s29, 4  ;;  %s399_s30 = int_to_ptr.vmem [resolvable:$true] %s398_s30 }
 0x231   :  { %s525_s6 = scalar_lea.vmem %s399_s30, 16  ;;  %s529_s4 = scalar_lea.vmem %s399_s30, 32 }
 0x232   :  { %p526_p10 = scmp.ne.s32.totalorder %s399_s30, %s525_s6  ;;  %p530_p11 = scmp.lt.s32.totalorder %s399_s30, %s399_s30 }
 0x233   :  { %p531_p12 = scmp.lt.s32.totalorder %s529_s4, %s525_s6 }
 0x235   :  { %p532_p13 = por %p531_p12, %p530_p11 }
 0x237   :  { %p533_p0 = pnand %p532_p13, %p526_p10 }
 0x23a   :  { %v456_v44 = vpop.eup %455 }
 0x23b   :  { %v263_v46 = vmul.f32 %v456_v44, %v259_v45 }
 0x2f5   :  { %v255_v47 = vpop.f32.mrb[0].mxu1 }
 0x2f6   :  { %v264_v48 = vadd.f32 %v263_v46, %v255_v47  ;;  %v434_v49 = vpop.f32.mrb[1].mxu1 }
 0x2f8   :  { %266 = vst.msk [vmem:[#allocation3] sm:$0xff] %vm50_vm2, %v264_v48 }
 0x2f9   :  { %v346_v50 = vpop.f32.mrb[2].mxu1 }
 0x2fa   :  { %352 = vst.msk [vmem:[#allocation13] sm:$0x1] %vm350_vm5, %v346_v50  ;;  %v439_v51 = vpop.f32.mrb[3].mxu1 }
 0x2fb   :  { %536 = shalt.err (!%p533_p0)
}
 0x2fc   :  { %s537_s9 = scalar_lea.hbm %s710_s5, 16 }
 0x2fd   :  { %p538_p1 = scmp.ne.s32.totalorder %s710_s5, %s537_s9  ;;  %p541_p2 = scmp.lt.u32.totalorder %s537_s9, %s710_s5 }
 0x2ff   :  { %p543_p3 = pnand %p541_p2, %p538_p1 }
 0x301   :  { %546 = shalt.err (!%p543_p3)
}
 0x302   :  { %401 = dma.vmem_to_hbm [thread:$0]  %s399_s30, 16, %s710_s5, [#allocation12]   ;;  %v357_v52 = vld [vmem:[#allocation3] sm:$0xff]  ;;  %v356_v55 = vld [vmem:[#allocation2] sm:$0xff] }
 0x303   :  { %457 = vlog2.f32 %v357_v52  ;;  %s586_s15 = smov [#allocation10]   ;;  %v368_v0 = vld [vmem:[#allocation10] sm:$0x1] }
 0x304   :  { %s378_s2 = sshll.u32 %s586_s15, 4  ;;  %s379_s2 = int_to_ptr.vmem [resolvable:$true] %s378_s2 }
 0x305   :  { %s547_s5 = scalar_lea.vmem %s379_s2, 16  ;;  %s551_s16 = scalar_lea.vmem %s379_s2, 32 }
 0x306   :  { %p548_p4 = scmp.ne.s32.totalorder %s379_s2, %s547_s5  ;;  %p552_p5 = scmp.lt.s32.totalorder %s379_s2, %s379_s2 }
 0x307   :  { %p553_p6 = scmp.lt.s32.totalorder %s551_s16, %s547_s5 }
 0x309   :  { %p554_p7 = por %p553_p6, %p552_p5 }
 0x30b   :  { %p555_p8 = pnand %p554_p7, %p548_p4 }
 0x30d   :  { %v458_v53 = vpop.eup %457 }
 0x30e   :  { %v359_v54 = vmul.f32 0.6931472, %v458_v53 }
 0x310   :  { %v360_v56 = vadd.f32 %v359_v54, %v356_v55 }
 0x312   :  { %v361_v57 = vsel %vm50_vm2, %v360_v56, 0.0 }
 0x313   :  { %v362_v58 = vrot.slane %v361_v57, 4 }
 0x315   :  { %v363_v59 = vadd.f32 %v362_v58, %v361_v57 }
 0x317   :  { %v364_v60 = vrot.slane %v363_v59, 2 }
 0x319   :  { %v365_v61 = vadd.f32 %v364_v60, %v363_v59 }
 0x31b   :  { %v366_v62 = vrot.slane %v365_v61, 1 }
 0x31d   :  { %v367_v63 = vadd.f32 %v366_v62, %v365_v61 }
 0x31f   :  { %v369_v1 = vadd.f32 %v368_v0, %v367_v63 }
 0x321   :  { %371 = vst.msk [vmem:[#allocation10] sm:$0x1] %vm48_vm6, %v369_v1 }
 0x322   :  { %558 = shalt.err (!%p555_p8)
}
 0x323   :  { %s559_s18 = scalar_lea.hbm %s708_s3, 16 }
 0x324   :  { %p560_p9 = scmp.ne.s32.totalorder %s708_s3, %s559_s18  ;;  %p563_p10 = scmp.lt.u32.totalorder %s559_s18, %s708_s3 }
 0x326   :  { %p565_p11 = pnand %p563_p10, %p560_p9 }
 0x328   :  { %568 = shalt.err (!%p565_p11)
}
 0x329   :  { %381 = dma.vmem_to_hbm [thread:$0]  %s379_s2, 16, %s708_s3, [#allocation7]  }
 0x32a   :  { %573 = dma.done.wait [#allocation7], 16  }
 0x32b   :  { %574 = vsyncadd [#allocation7], 4294967280 }
 0x32c   :  { %575 = dma.done.wait [#allocation12], 32  }
 0x32d   :  { %576 = vsyncadd [#allocation12], 4294967264 }
 0x32e   :  { %411 = vsyncpa [#allocation6], 1 }
 0x32f   :  { %412 = vsyncpa [#allocation9], 1 }
 0x330   :  { %413 = vsyncpa [#allocation7], 1 }
 0x331   :  { %414 = vsyncpa [#allocation12], 1 }

</bundles_post_ra>
